<compile_context>
chip_gen: v6e
topology: v6e:2x2x1
jax: 0.10.0
libtpu: 0.0.40
codegen_flags: <defaults>
</compile_context>

<pallas_src>
import functools

import jax
import jax.numpy as jnp
from jax.experimental import pallas as pl
from jax.experimental.pallas import tpu as pltpu


_VMEM_SPEC = pl.BlockSpec(memory_space=pltpu.MemorySpace.VMEM)

_LANE = 128


def _pad_to_lane(n):
    return ((n + _LANE - 1) // _LANE) * _LANE


# ----------------------------------------------------------------------------
# Fused Pallas kernel
# ----------------------------------------------------------------------------

def _fused_gcn_kernel(x_ref, w1_ref, b1_ref, a_ref, qa_ref, w2_ref, b2_ref,
                      o_ref, *, alpha, num_steps):
    """fcs[0]+ReLU -> phenomnn GraphConvolution (H is None) -> ReLU -> fcs[-1].

    a_ref  : A_scaled = diag(qa) @ (lam0*A_beta + lam1*A_gamma)   (N, N)
    qa_ref : alpha / (lam0*d_beta + lam1*d_gamma + 1)             (N, 1)
    w1/b1 lane-padded to nhid_pad columns, w2/b2 to (nhid_pad, ncls_pad).
    """
    # --- fcs[0] + ReLU  (Y0, lane-dense (N, nhid_pad)) -----------------------
    y0 = jnp.dot(x_ref[...], w1_ref[...], preferred_element_type=jnp.float32)
    y0 = jnp.maximum(y0 + b1_ref[...], 0.0)

    # --- GraphConvolution propagation ----------------------------------------
    #   Y_hat = lam0*A_beta@Y + lam1*A_gamma@Y + Y0
    #   Y     = (1-alpha)*Y + alpha*Qinv*Y_hat
    # with alpha*Qinv folded into A (wrapper) and qa*Y0 hoisted out of the loop
    # (single broadcast of the (N,1) qa column, not one per step).
    a = a_ref[...]
    y0_scaled = qa_ref[...] * y0              # loop invariant
    one_minus_alpha = 1.0 - alpha
    y = y0
    # num_steps is small (2); static unroll.  TODO(synk): switch to
    # lax.fori_loop(..., unroll=True) if prop_step grows beyond a handful to
    # bound vreg live ranges.
    for _ in range(num_steps):
        y = (one_minus_alpha * y
             + jnp.dot(a, y, preferred_element_type=jnp.float32)
             + y0_scaled)

    # --- trailing ReLU (phenomnn act_fn) + fcs[-1], lane-dense store ----------
    y = jnp.maximum(y, 0.0)
    out = jnp.dot(y, w2_ref[...], preferred_element_type=jnp.float32) + b2_ref[...]
    o_ref[...] = out.astype(o_ref.dtype)


# ----------------------------------------------------------------------------
# One-time operand preparation (hoisted out of the per-forward path)
# ----------------------------------------------------------------------------

def prepare_gcn_operands(params, a_beta, a_gamma, d_beta, d_gamma,
                         *, lam0, lam1, alpha):
    """Fold/pad everything that does not depend on x.  Call once, reuse."""
    n = a_beta.shape[0]
    nfeat, nhid = params["w1"].shape
    nclass = params["w2"].shape[1]
    nhid_pad = _pad_to_lane(nhid)
    ncls_pad = _pad_to_lane(nclass)

    # alpha * Q_tild^-1 diagonal.
    qa = (alpha / (lam0 * d_beta + lam1 * d_gamma + 1.0))
    qa = qa.reshape(n, 1).astype(jnp.float32)
    # Row-scaled combined adjacency: qa*(A_comb @ y) == (diag(qa)@A_comb) @ y.
    a_scaled = qa * (lam0 * a_beta + lam1 * a_gamma).astype(jnp.float32)

    # Lane-pad fc1 so Y/Y0 are lane-dense (padded cols provably stay zero).
    w1 = params["w1"].astype(jnp.float32)
    b1 = params["b1"].astype(jnp.float32)
    w1p = jnp.zeros((nfeat, nhid_pad), jnp.float32).at[:, :nhid].set(w1)
    b1p = jnp.zeros((1, nhid_pad), jnp.float32).at[:, :nhid].set(b1)

    # Lane-pad the classifier for an unmasked, lane-dense output store.
    w2 = params["w2"].astype(jnp.float32)
    b2 = params["b2"].astype(jnp.float32)
    w2p = jnp.zeros((nhid_pad, ncls_pad), jnp.float32).at[:nhid, :nclass].set(w2)
    b2p = jnp.zeros((1, ncls_pad), jnp.float32).at[:, :nclass].set(b2)

    prepped = {"a_scaled": a_scaled, "qa": qa,
               "w1p": w1p, "b1p": b1p, "w2p": w2p, "b2p": b2p}
    meta = {"n": n, "nfeat": nfeat, "nhid_pad": nhid_pad,
            "nclass": nclass, "ncls_pad": ncls_pad}
    return jax.device_put(prepped), meta


# ----------------------------------------------------------------------------
# Forward (per-call path: one fused pallas_call + slice)
# ----------------------------------------------------------------------------

@functools.partial(jax.jit,
                   static_argnames=("alpha", "num_steps", "nclass", "ncls_pad"))
def gcn_model_forward(prepped, x, *, alpha, num_steps, nclass, ncls_pad):
    # TODO(synk): F.dropout is stochastic; modeled as identity (eval mode).
    n, nfeat = x.shape
    nhid_pad = prepped["w1p"].shape[1]

    flops = (2 * n * nfeat * nhid_pad                 # fc1
             + num_steps * (2 * n * n * nhid_pad      # A_scaled @ y
                            + 3 * n * nhid_pad)       # fma chain
             + 2 * n * nhid_pad * ncls_pad)           # fc2
    bytes_accessed = 4 * (x.size + prepped["w1p"].size + prepped["b1p"].size
                          + prepped["a_scaled"].size + prepped["qa"].size
                          + prepped["w2p"].size + prepped["b2p"].size
                          + n * ncls_pad)
    cost = pl.CostEstimate(flops=flops, transcendentals=0,
                           bytes_accessed=bytes_accessed)

    kernel = functools.partial(_fused_gcn_kernel, alpha=alpha,
                               num_steps=num_steps)
    out_pad = pl.pallas_call(
        kernel,
        out_shape=jax.ShapeDtypeStruct((n, ncls_pad), jnp.float32),
        in_specs=[_VMEM_SPEC] * 7,
        out_specs=_VMEM_SPEC,
        cost_estimate=cost,
    )(x.astype(jnp.float32),
      prepped["w1p"], prepped["b1p"],
      prepped["a_scaled"], prepped["qa"],
      prepped["w2p"], prepped["b2p"])
    return out_pad[:, :nclass]


# ----------------------------------------------------------------------------
# Plain-JAX reference mirroring the PyTorch module (for verification)
# ----------------------------------------------------------------------------

def reference_forward(params, x, a_beta, a_gamma, d_beta, d_gamma,
                      *, lam0, lam1, alpha, num_steps):
    y0 = jax.nn.relu(x @ params["w1"] + params["b1"])
    qinv = (1.0 / (lam0 * d_beta + lam1 * d_gamma + 1.0))[:, None]
    y = y0
    for _ in range(num_steps):
        y_hat = lam0 * (a_beta @ y) + y0 + lam1 * (a_gamma @ y)
        y = (1.0 - alpha) * y + alpha * (qinv * y_hat)
    y = jax.nn.relu(y)
    return y @ params["w2"] + params["b2"]


# ----------------------------------------------------------------------------
# Main
# ----------------------------------------------------------------------------

if __name__ == "__main__":
    N, NFEAT, NHID, NCLASS = 128, 32, 32, 8
    N_EDGES = 64
    LAM0, LAM1 = 1.0, 1.0
    ALPHA = 1.0 / (1.0 + LAM0 + LAM1)   # args.alp == 0
    PROP_STEPS = 2

    key = jax.random.PRNGKey(0)
    k_x, k_b, k_w1, k_b1, k_w2, k_b2 = jax.random.split(key, 6)

    # Node features.
    x = jax.random.normal(k_x, (N, NFEAT), dtype=jnp.float32)

    # Synthetic hypergraph incidence -> dense adjacencies (B2A 'none'-style).
    B = (jax.random.uniform(k_b, (N, N_EDGES)) < 0.1).astype(jnp.float32)
    a_beta = B @ B.T + jnp.eye(N, dtype=jnp.float32)
    d_beta = jnp.sum(a_beta, axis=1)
    a_gamma = 0.5 * (a_beta + a_beta.T)   # second adjacency (clique-expansion style)
    d_gamma = jnp.sum(a_gamma, axis=1)

    # Deterministic parameter init (nn.Linear shapes).
    w1 = jax.random.normal(k_w1, (NFEAT, NHID), dtype=jnp.float32) * (1.0 / NFEAT ** 0.5)
    b1 = jax.random.normal(k_b1, (NHID,), dtype=jnp.float32) * 0.01
    w2 = jax.random.normal(k_w2, (NHID, NCLASS), dtype=jnp.float32) * (1.0 / NHID ** 0.5)
    b2 = jax.random.normal(k_b2, (NCLASS,), dtype=jnp.float32) * 0.01
    params = {"w1": w1, "b1": b1, "w2": w2, "b2": b2}

    # One-time prep (folded adjacency, lane padding) outside the hot path.
    prepped, meta = prepare_gcn_operands(params, a_beta, a_gamma, d_beta,
                                         d_gamma, lam0=LAM0, lam1=LAM1,
                                         alpha=ALPHA)

    out = gcn_model_forward(prepped, x, alpha=ALPHA, num_steps=PROP_STEPS,
                            nclass=meta["nclass"], ncls_pad=meta["ncls_pad"])
    out = jax.block_until_ready(out)

    ref = reference_forward(params, x, a_beta, a_gamma, d_beta, d_gamma,
                            lam0=LAM0, lam1=LAM1, alpha=ALPHA,
                            num_steps=PROP_STEPS)
    assert out.shape == (N, NCLASS)
    assert jnp.allclose(out, ref, atol=1e-3, rtol=1e-3), "mismatch vs reference"

    print("KERNEL_OK")
</pallas_src>

<mosaic_0001>
module attributes {stable_mosaic.version = 11 : i64} {
  func.func @_fused_gcn_kernel(%arg0: memref<128x32xf32, #tpu.memory_space<vmem>>, %arg1: memref<32x128xf32, #tpu.memory_space<vmem>>, %arg2: memref<1x128xf32, #tpu.memory_space<vmem>>, %arg3: memref<128x128xf32, #tpu.memory_space<vmem>>, %arg4: memref<128x1xf32, #tpu.memory_space<vmem>>, %arg5: memref<128x128xf32, #tpu.memory_space<vmem>>, %arg6: memref<1x128xf32, #tpu.memory_space<vmem>>, %arg7: memref<128x128xf32, #tpu.memory_space<vmem>>) attributes {dimension_semantics = [], scalar_prefetch = 0 : i64, scratch_operands = 0 : i64, tpu.core_type = #tpu.core_type<tc>} {
    %c0 = arith.constant 0 : index
    %c0_0 = arith.constant 0 : index
    %0 = vector.load %arg0[%c0, %c0_0] : memref<128x32xf32, #tpu.memory_space<vmem>>, vector<128x32xf32>
    %c0_1 = arith.constant 0 : index
    %c0_2 = arith.constant 0 : index
    %1 = vector.load %arg1[%c0_1, %c0_2] : memref<32x128xf32, #tpu.memory_space<vmem>>, vector<32x128xf32>
    %cst = arith.constant dense<0.000000e+00> : vector<128x128xf32>
    %2 = tpu.matmul %0, %1, %cst {dimension_numbers = #tpu.dot_dimension_numbers<[1], [0], [0], [1], [0, 0, 1, 1], [], []>} : vector<128x32xf32>, vector<32x128xf32>, vector<128x128xf32> -> vector<128x128xf32>
    %c0_3 = arith.constant 0 : index
    %c0_4 = arith.constant 0 : index
    %3 = vector.load %arg2[%c0_3, %c0_4] : memref<1x128xf32, #tpu.memory_space<vmem>>, vector<1x128xf32>
    %4 = vector.broadcast %3 : vector<1x128xf32> to vector<128x128xf32>
    %5 = arith.addf %2, %4 : vector<128x128xf32>
    %cst_5 = arith.constant 0.000000e+00 : f32
    %6 = vector.broadcast %cst_5 : f32 to vector<128x128xf32>
    %7 = arith.maximumf %5, %6 : vector<128x128xf32>
    %c0_6 = arith.constant 0 : index
    %c0_7 = arith.constant 0 : index
    %8 = vector.load %arg3[%c0_6, %c0_7] : memref<128x128xf32, #tpu.memory_space<vmem>>, vector<128x128xf32>
    %c0_8 = arith.constant 0 : index
    %c0_9 = arith.constant 0 : index
    %9 = vector.load %arg4[%c0_8, %c0_9] : memref<128x1xf32, #tpu.memory_space<vmem>>, vector<128x1xf32>
    %10 = vector.broadcast %9 : vector<128x1xf32> to vector<128x128xf32>
    %11 = arith.mulf %10, %7 : vector<128x128xf32>
    %cst_10 = arith.constant 0.666666686 : f32
    %12 = vector.broadcast %cst_10 : f32 to vector<128x128xf32>
    %13 = arith.mulf %12, %7 : vector<128x128xf32>
    %cst_11 = arith.constant dense<0.000000e+00> : vector<128x128xf32>
    %14 = tpu.matmul %8, %7, %cst_11 {dimension_numbers = #tpu.dot_dimension_numbers<[1], [0], [0], [1], [0, 0, 1, 1], [], []>} : vector<128x128xf32>, vector<128x128xf32>, vector<128x128xf32> -> vector<128x128xf32>
    %15 = arith.addf %13, %14 : vector<128x128xf32>
    %16 = arith.addf %15, %11 : vector<128x128xf32>
    %cst_12 = arith.constant 0.666666686 : f32
    %17 = vector.broadcast %cst_12 : f32 to vector<128x128xf32>
    %18 = arith.mulf %17, %16 : vector<128x128xf32>
    %cst_13 = arith.constant dense<0.000000e+00> : vector<128x128xf32>
    %19 = tpu.matmul %8, %16, %cst_13 {dimension_numbers = #tpu.dot_dimension_numbers<[1], [0], [0], [1], [0, 0, 1, 1], [], []>} : vector<128x128xf32>, vector<128x128xf32>, vector<128x128xf32> -> vector<128x128xf32>
    %20 = arith.addf %18, %19 : vector<128x128xf32>
    %21 = arith.addf %20, %11 : vector<128x128xf32>
    %cst_14 = arith.constant 0.000000e+00 : f32
    %22 = vector.broadcast %cst_14 : f32 to vector<128x128xf32>
    %23 = arith.maximumf %21, %22 : vector<128x128xf32>
    %c0_15 = arith.constant 0 : index
    %c0_16 = arith.constant 0 : index
    %24 = vector.load %arg5[%c0_15, %c0_16] : memref<128x128xf32, #tpu.memory_space<vmem>>, vector<128x128xf32>
    %cst_17 = arith.constant dense<0.000000e+00> : vector<128x128xf32>
    %25 = tpu.matmul %23, %24, %cst_17 {dimension_numbers = #tpu.dot_dimension_numbers<[1], [0], [0], [1], [0, 0, 1, 1], [], []>} : vector<128x128xf32>, vector<128x128xf32>, vector<128x128xf32> -> vector<128x128xf32>
    %c0_18 = arith.constant 0 : index
    %c0_19 = arith.constant 0 : index
    %26 = vector.load %arg6[%c0_18, %c0_19] : memref<1x128xf32, #tpu.memory_space<vmem>>, vector<1x128xf32>
    %27 = vector.broadcast %26 : vector<1x128xf32> to vector<128x128xf32>
    %28 = arith.addf %25, %27 : vector<128x128xf32>
    %c0_20 = arith.constant 0 : index
    %c0_21 = arith.constant 0 : index
    %29 = vector.load %arg7[%c0_20, %c0_21] : memref<128x128xf32, #tpu.memory_space<vmem>>, vector<128x128xf32>
    tpu.vector_store %arg7[%c0_20, %c0_21], %28 {strides = array<i32>} : memref<128x128xf32, #tpu.memory_space<vmem>>, vector<128x128xf32>,
    return
  }
}

</mosaic_0001>

<bundles_post_ra>
// kernel: gcn_model_forward.1
= control target key start
LH: loop header
LB: loop body
LE: loop exit
PB: predicated region body
PF: predicated region fallthrough
CT: control target
= control target key end

     0   :  { %12 = vsyncpa [#allocation3], 0  ;;  %s1390_s24 = smov [#allocation2]   ;;  %s2092_s0 = inlined_call_operand.vmem [shape: f32[128,32], index: 0, kind: input, shape index: {}]   ;;  %s2093_s1 = inlined_call_operand.hbm [shape: f32[32,128], index: 1, kind: input, shape index: {}]   ;;  %s2094_s2 = inlined_call_operand.vmem [shape: f32[1,128], index: 2, kind: input, shape index: {}]   ;;  %s2095_s3 = inlined_call_operand.vmem [shape: f32[128,128], index: 3, kind: input, shape index: {}]   ;;  %s2096_s4 = inlined_call_operand.vmem [shape: f32[128,1], index: 4, kind: input, shape index: {}]   ;;  %s2097_s5 = inlined_call_operand.vmem [shape: f32[128,128], index: 5, kind: input, shape index: {}]   ;;  %s2098_s6 = inlined_call_operand.vmem [shape: f32[1,128], index: 6, kind: input, shape index: {}]   ;;  %s2099_s7 = inlined_call_operand.vmem [shape: f32[128,128], index: 7, kind: output, shape index: {}]  }
   0x1   :  { %s20_s25 = sshll.u32 %s1390_s24, 4  ;;  %s21_s25 = int_to_ptr.vmem [resolvable:$true] %s20_s25 }
   0x2   :  { %s1376_s26 = scalar_lea.vmem %s21_s25, 512  ;;  %p1381_p1 = scmp.lt.s32.totalorder %s21_s25, %s21_s25 }
   0x3   :  { %p1377_p0 = scmp.ne.s32.totalorder %s21_s25, %s1376_s26  ;;  %p1382_p2 = scmp.lt.s32.totalorder %s1376_s26, %s1376_s26 }
   0x5   :  { %p1383_p3 = por %p1382_p2, %p1381_p1 }
   0x7   :  { %p1384_p4 = pnand %p1383_p3, %p1377_p0 }
   0x9   :  { %1387 = shalt.err (!%p1384_p4)
}
   0xa   :  { %s1391_s27 = smov 128   ;;  %s1392_s28 = smov 8  }
   0xb   :  { %26 = dma.hbm_to_vmem [thread:$0]  %s2093_s1, 512, %s21_s25, [#allocation3], %s1391_s27, %s1391_s27, %s1392_s28  }
   0xc   :  { %1388 = dma.done.wait [#allocation3], 512  }
   0xd   :  { %1389 = vsyncadd [#allocation3], 4294966784  ;;  %v1393_v0 = vmov 0   ;;  %vm67_vm0 = vcmask 261120   ;;  %v59_v1 = vld [vmem:[#allocation2 + $0x18] sm:$0xff]  ;;  %v58_v2 = vld [vmem:[#allocation2 + $0x10] sm:$0xff] }
   0xe   :  { %1366 = vset.pattern.permute.xlu0 %v1393_v0  ;;  %1367 = vset.pattern.permute.xlu1 %v1393_v0  ;;  %v40_v3 = vld [vmem:[%s2092_s0] sm:$0xff]  ;;  %v57_v4 = vld [vmem:[#allocation2 + $0x8] sm:$0xff]  ;;  %v308_v7 = vld [vmem:[%s2096_s4 + $0x78] sm:$0xff] }
   0xf   :  { %1130 = vmatprep.subr.mxu0 %v59_v1  ;;  %1138 = vmatprep.mubr.msk.f32.mxu0 %vm67_vm0, %v40_v3  ;;  %v56_v5 = vld [vmem:[#allocation2] sm:$0xff]  ;;  %v41_v6 = vld [vmem:[%s2092_s0 + $0x8] sm:$0xff]  ;;  %v42_v8 = vld [vmem:[%s2092_s0 + $0x10] sm:$0xff] }
  0x10   :  { %1131 = vmatpush3.msra.mxu0 %v59_v1  ;;  %386 = vperm.xlu0 %1366, %v308_v7   ;;  %v306_v9 = vld [vmem:[%s2096_s4 + $0x68] sm:$0xff]  ;;  %v307_v10 = vld [vmem:[%s2096_s4 + $0x70] sm:$0xff]  ;;  %v305_v11 = vld [vmem:[%s2096_s4 + $0x60] sm:$0xff] }
  0x11   :  { %1132 = vmatprep.subr.mxu0 %v58_v2  ;;  %376 = vperm.xlu1 %1367, %v306_v9   ;;  %v43_v12 = vld [vmem:[%s2092_s0 + $0x18] sm:$0xff]  ;;  %v44_v13 = vld [vmem:[%s2092_s0 + $0x20] sm:$0xff]  ;;  %v303_v15 = vld [vmem:[%s2096_s4 + $0x50] sm:$0xff] }
  0x12   :  { %1133 = vmatpush3.msra.mxu0 %v58_v2  ;;  %v304_v14 = vld [vmem:[%s2096_s4 + $0x58] sm:$0xff]  ;;  %v45_v16 = vld [vmem:[%s2092_s0 + $0x28] sm:$0xff]  ;;  %v46_v17 = vld [vmem:[%s2092_s0 + $0x30] sm:$0xff] }
  0x13   :  { %1134 = vmatprep.subr.mxu0 %v57_v4  ;;  %v302_v18 = vld [vmem:[%s2096_s4 + $0x48] sm:$0xff]  ;;  %v301_v19 = vld [vmem:[%s2096_s4 + $0x40] sm:$0xff]  ;;  %v47_v20 = vld [vmem:[%s2092_s0 + $0x38] sm:$0xff] }
  0x14   :  { %1135 = vmatpush3.msra.mxu0 %v57_v4  ;;  %381 = vperm.xlu0 %1366, %v307_v10   ;;  %v48_v21 = vld [vmem:[%s2092_s0 + $0x40] sm:$0xff]  ;;  %v300_v22 = vld [vmem:[%s2096_s4 + $0x38] sm:$0xff]  ;;  %v299_v23 = vld [vmem:[%s2096_s4 + $0x30] sm:$0xff] }
  0x15   :  { %1136 = vmatprep.subr.mxu0 %v56_v5  ;;  %371 = vperm.xlu1 %1367, %v305_v11   ;;  %v49_v24 = vld [vmem:[%s2092_s0 + $0x48] sm:$0xff]  ;;  %v50_v25 = vld [vmem:[%s2092_s0 + $0x50] sm:$0xff]  ;;  %v297_v27 = vld [vmem:[%s2096_s4 + $0x20] sm:$0xff] }
  0x16   :  { %1137 = vmatpush3.msra.mxu0 %v56_v5  ;;  %v298_v26 = vld [vmem:[%s2096_s4 + $0x28] sm:$0xff]  ;;  %v51_v28 = vld [vmem:[%s2092_s0 + $0x58] sm:$0xff]  ;;  %v52_v29 = vld [vmem:[%s2092_s0 + $0x60] sm:$0xff] }
  0x17   :  { %1139 = vmatmul.mubr.msk.f32.vlgmr.msra.gmra.mxu0 %vm67_vm0, %v41_v6  ;;  %v296_v30 = vld [vmem:[%s2096_s4 + $0x18] sm:$0xff]  ;;  %v295_v31 = vld [vmem:[%s2096_s4 + $0x10] sm:$0xff]  ;;  %v53_v32 = vld [vmem:[%s2092_s0 + $0x68] sm:$0xff] }
  0x18   :  { %1141 = vmatprep.mubr.msk.f32.mxu0 %vm67_vm0, %v42_v8  ;;  %366 = vperm.xlu0 %1366, %v304_v14   ;;  %v54_v33 = vld [vmem:[%s2092_s0 + $0x70] sm:$0xff]  ;;  %v294_v34 = vld [vmem:[%s2096_s4 + $0x8] sm:$0xff]  ;;  %v293_v35 = vld [vmem:[%s2096_s4] sm:$0xff] }
  0x19   :  { %361 = vperm.xlu1 %1367, %v303_v15   ;;  %v55_v36 = vld [vmem:[%s2092_s0 + $0x78] sm:$0xff]  ;;  %v277_v37 = vld [vmem:[%s2095_s3] sm:$0xff] }
  0x1a   :  { %1194 = vmatprep.mubr.f32.mxu1 %v277_v37  ;;  %v996_v52 = vld [vmem:[%s2094_s2] ss:$0 sm:$0xff] }
  0x1b   :  { %1142 = vmatmul.mubr.msk.f32.gmra.mxu0 %vm67_vm0, %v43_v12 }
  0x1c   :  { %1144 = vmatprep.mubr.msk.f32.mxu0 %vm67_vm0, %v44_v13  ;;  %356 = vperm.xlu0 %1366, %v302_v18  }
  0x1d   :  { %351 = vperm.xlu1 %1367, %v301_v19  }
  0x1f   :  { %1145 = vmatmul.mubr.msk.f32.gmra.mxu0 %vm67_vm0, %v45_v16 }
  0x20   :  { %1147 = vmatprep.mubr.msk.f32.mxu0 %vm67_vm0, %v46_v17  ;;  %346 = vperm.xlu0 %1366, %v300_v22  }
  0x21   :  { %341 = vperm.xlu1 %1367, %v299_v23   ;;  %v1626_v23 = vld [vmem:[%s2095_s3 + $0x8] sm:$0xff] }
  0x23   :  { %1148 = vmatmul.mubr.msk.f32.gmra.mxu0 %vm67_vm0, %v47_v20 }
  0x24   :  { %1150 = vmatprep.mubr.msk.f32.mxu0 %vm67_vm0, %v48_v21  ;;  %336 = vperm.xlu0 %1366, %v298_v26   ;;  %v1645_v26 = vld [vmem:[%s2095_s3 + $0x20] sm:$0xff] }
  0x25   :  { %331 = vperm.xlu1 %1367, %v297_v27   ;;  %v1652_v27 = vld [vmem:[%s2095_s3 + $0x28] sm:$0xff] }
  0x27   :  { %1151 = vmatmul.mubr.msk.f32.gmra.mxu0 %vm67_vm0, %v49_v24  ;;  %v1632_v24 = vld [vmem:[%s2095_s3 + $0x10] sm:$0xff] }
  0x28   :  { %1153 = vmatprep.mubr.msk.f32.mxu0 %vm67_vm0, %v50_v25  ;;  %326 = vperm.xlu0 %1366, %v296_v30   ;;  %v1640_v25 = vld [vmem:[%s2095_s3 + $0x18] sm:$0xff]  ;;  %v1669_v30 = vld [vmem:[%s2095_s3 + $0x40] sm:$0xff] }
  0x29   :  { %321 = vperm.xlu1 %1367, %v295_v31   ;;  %2118 = vst [vmem:[#allocation5_spill] sm:$0xff] %v1669_v30  ;;  %v1676_v31 = vld [vmem:[%s2095_s3 + $0x48] sm:$0xff] }
  0x2a   :  { %2119 = vst [vmem:[#allocation6_spill] sm:$0xff] %v1676_v31 }
  0x2b   :  { %1154 = vmatmul.mubr.msk.f32.gmra.mxu0 %vm67_vm0, %v51_v28  ;;  %v1657_v28 = vld [vmem:[%s2095_s3 + $0x30] sm:$0xff] }
  0x2c   :  { %1156 = vmatprep.mubr.msk.f32.mxu0 %vm67_vm0, %v52_v29  ;;  %316 = vperm.xlu0 %1366, %v294_v34   ;;  %v1664_v29 = vld [vmem:[%s2095_s3 + $0x38] sm:$0xff]  ;;  %v1693_v34 = vld [vmem:[%s2095_s3 + $0x60] sm:$0xff] }
  0x2d   :  { %311 = vperm.xlu1 %1367, %v293_v35   ;;  %2122 = vst [vmem:[#allocation9_spill] sm:$0xff] %v1693_v34  ;;  %v1700_v35 = vld [vmem:[%s2095_s3 + $0x68] sm:$0xff] }
  0x2e   :  { %2123 = vst [vmem:[#allocation10_spill] sm:$0xff] %v1700_v35 }
  0x2f   :  { %1157 = vmatmul.mubr.msk.f32.gmra.mxu0 %vm67_vm0, %v53_v32  ;;  %v1681_v32 = vld [vmem:[%s2095_s3 + $0x50] sm:$0xff] }
  0x30   :  { %1159 = vmatprep.mubr.msk.f32.mxu0 %vm67_vm0, %v54_v33  ;;  %2120 = vst [vmem:[#allocation7_spill] sm:$0xff] %v1681_v32  ;;  %v1688_v33 = vld [vmem:[%s2095_s3 + $0x58] sm:$0xff] }
  0x31   :  { %2121 = vst [vmem:[#allocation8_spill] sm:$0xff] %v1688_v33 }
  0x33   :  { %1160 = vmatmul.mubr.msk.f32.gmra.mxu0 %vm67_vm0, %v55_v36  ;;  %v1705_v36 = vld [vmem:[%s2095_s3 + $0x70] sm:$0xff] }
  0x34   :  { %1250 = vmatprep.mubr.f32.mxu0 %v277_v37  ;;  %2124 = vst [vmem:[#allocation11_spill] sm:$0xff] %v1705_v36  ;;  %v1712_v37 = vld [vmem:[%s2095_s3 + $0x78] sm:$0xff] }
  0x35   :  { %2125 = vst [vmem:[#allocation12_spill] sm:$0xff] %v1712_v37 }
  0xd7   :  { %v1552_v38 = vpop.f32.mrf.mxu0 }
  0xd8   :  { %v188_v17 = vadd.f32 %v1552_v38, %v996_v52  ;;  %v1718_v38 = vld [vmem:[%s2097_s5 + $0x78] sm:$0xff] }
  0xd9   :  { %v1554_v39 = vpop.f32.mrf.mxu0 }
  0xda   :  { %v183_v19 = vadd.f32 %v996_v52, %v1554_v39  ;;  %v1615_v21 = vmax.f32 %v188_v17, 0.0  ;;  %v1724_v39 = vld [vmem:[%s2097_s5 + $0x70] sm:$0xff] }
  0xdb   :  { %v1143_v40 = vpop.f32.mrf.mxu0 }
  0xdc   :  { %v198_v13 = vadd.f32 %v1143_v40, %v996_v52  ;;  %v1619_v22 = vmax.f32 %v183_v19, 0.0  ;;  %v1731_v40 = vld [vmem:[%s2097_s5 + $0x68] sm:$0xff] }
  0xdd   :  { %v192_v41 = vpop.f32.mrf.mxu0 }
  0xde   :  { %v193_v15 = vadd.f32 %v996_v52, %v192_v41  ;;  %v1606_v18 = vmax.f32 %v198_v13, 0.0  ;;  %v1738_v41 = vld [vmem:[%s2097_s5 + $0x60] sm:$0xff] }
  0xdf   :  { %v1146_v42 = vpop.f32.mrf.mxu0 }
  0xe0   :  { %v208_v9 = vadd.f32 %v1146_v42, %v996_v52  ;;  %v1611_v20 = vmax.f32 %v193_v15, 0.0  ;;  %v1745_v42 = vld [vmem:[%s2097_s5 + $0x58] sm:$0xff] }
  0xe1   :  { %v202_v43 = vpop.f32.mrf.mxu0 }
  0xe2   :  { %v203_v11 = vadd.f32 %v996_v52, %v202_v43  ;;  %v1597_v14 = vmax.f32 %v208_v9, 0.0  ;;  %v1752_v43 = vld [vmem:[%s2097_s5 + $0x50] sm:$0xff] }
  0xe3   :  { %v1149_v44 = vpop.f32.mrf.mxu0 }
  0xe4   :  { %v218_v5 = vadd.f32 %v1149_v44, %v996_v52  ;;  %v1601_v16 = vmax.f32 %v203_v11, 0.0  ;;  %v1759_v44 = vld [vmem:[%s2097_s5 + $0x48] sm:$0xff] }
  0xe5   :  { %v212_v45 = vpop.f32.mrf.mxu0  ;;  %2126 = vst [vmem:[#allocation13_spill] sm:$0xff] %v1759_v44 }
  0xe6   :  { %v213_v7 = vadd.f32 %v996_v52, %v212_v45  ;;  %v1589_v10 = vmax.f32 %v218_v5, 0.0  ;;  %v1766_v45 = vld [vmem:[%s2097_s5 + $0x40] sm:$0xff] }
  0xe7   :  { %v1152_v46 = vpop.f32.mrf.mxu0  ;;  %2127 = vst [vmem:[#allocation14_spill] sm:$0xff] %v1766_v45 }
  0xe8   :  { %v228_v1 = vadd.f32 %v1152_v46, %v996_v52  ;;  %v1593_v12 = vmax.f32 %v213_v7, 0.0  ;;  %v1773_v46 = vld [vmem:[%s2097_s5 + $0x38] sm:$0xff] }
  0xe9   :  { %v222_v47 = vpop.f32.mrf.mxu0  ;;  %2128 = vst [vmem:[#allocation15_spill] sm:$0xff] %v1773_v46 }
  0xea   :  { %v223_v3 = vadd.f32 %v996_v52, %v222_v47  ;;  %v1581_v6 = vmax.f32 %v228_v1, 0.0  ;;  %v1780_v47 = vld [vmem:[%s2097_s5 + $0x30] sm:$0xff] }
  0xeb   :  { %v1155_v48 = vpop.f32.mrf.mxu0  ;;  %2129 = vst [vmem:[#allocation16_spill] sm:$0xff] %v1780_v47 }
  0xec   :  { %v238_v61 = vadd.f32 %v1155_v48, %v996_v52  ;;  %v1585_v8 = vmax.f32 %v223_v3, 0.0  ;;  %v1787_v48 = vld [vmem:[%s2097_s5 + $0x28] sm:$0xff] }
  0xed   :  { %v232_v49 = vpop.f32.mrf.mxu0  ;;  %2130 = vst [vmem:[#allocation17_spill] sm:$0xff] %v1787_v48 }
  0xee   :  { %v233_v63 = vadd.f32 %v996_v52, %v232_v49  ;;  %v1573_v2 = vmax.f32 %v238_v61, 0.0 }
  0xef   :  { %v1158_v50 = vpop.f32.mrf.mxu0 }
  0xf0   :  { %v248_v56 = vadd.f32 %v1158_v50, %v996_v52  ;;  %v1577_v4 = vmax.f32 %v233_v63, 0.0 }
  0xf1   :  { %v242_v51 = vpop.f32.mrf.mxu0 }
  0xf2   :  { %v243_v59 = vadd.f32 %v996_v52, %v242_v51  ;;  %v1565_v62 = vmax.f32 %v248_v56, 0.0 }
  0xf3   :  { %v1161_v53 = vpop.f32.mrf.mxu0 }
  0xf4   :  { %v258_v54 = vadd.f32 %v1161_v53, %v996_v52  ;;  %v1569_v0 = vmax.f32 %v243_v59, 0.0 }
  0xf5   :  { %v252_v55 = vpop.f32.mrf.mxu0 }
  0xf6   :  { %v1559_v57 = vmax.f32 %v258_v54, 0.0  ;;  %v253_v58 = vadd.f32 %v996_v52, %v252_v55  ;;  %v387_v55 = vpop.permute.xlu0 %386 }
  0xf8   :  { %v1561_v60 = vmax.f32 %v253_v58, 0.0  ;;  %1162 = vmatprep.subr.mxu1 %v1559_v57  ;;  %v377_v58 = vpop.permute.xlu1 %376  ;;  %v420_v17 = vmul.f32 0.6666667, %v1559_v57 }
  0xf9   :  { %1163 = vmatpush3.msra.mxu1 %v1559_v57 }
  0xfa   :  { %1164 = vmatprep.subr.mxu1 %v1561_v60  ;;  %v382_v63 = vpop.permute.xlu0 %381 }
  0xfb   :  { %1165 = vmatpush3.msra.mxu1 %v1561_v60 }
  0xfc   :  { %1166 = vmatprep.subr.mxu1 %v1565_v62  ;;  %v372_v3 = vpop.permute.xlu1 %371 }
  0xfd   :  { %1167 = vmatpush3.msra.mxu1 %v1565_v62 }
  0xfe   :  { %1168 = vmatprep.subr.mxu1 %v1569_v0  ;;  %v367_v9 = vpop.permute.xlu0 %366 }
  0xff   :  { %1169 = vmatpush3.msra.mxu1 %v1569_v0 }
 0x100   :  { %1170 = vmatprep.subr.mxu1 %v1573_v2  ;;  %v362_v13 = vpop.permute.xlu1 %361 }
 0x101   :  { %1171 = vmatpush3.msra.mxu1 %v1573_v2 }
 0x102   :  { %1172 = vmatprep.subr.mxu1 %v1577_v4 }
 0x103   :  { %1173 = vmatpush3.msra.mxu1 %v1577_v4 }
 0x104   :  { %1174 = vmatprep.subr.mxu1 %v1581_v6 }
 0x105   :  { %1175 = vmatpush3.msra.mxu1 %v1581_v6 }
 0x106   :  { %1176 = vmatprep.subr.mxu1 %v1585_v8 }
 0x107   :  { %1177 = vmatpush3.msra.mxu1 %v1585_v8 }
 0x108   :  { %1178 = vmatprep.subr.mxu1 %v1589_v10 }
 0x109   :  { %1179 = vmatpush3.msra.mxu1 %v1589_v10 }
 0x10a   :  { %1180 = vmatprep.subr.mxu1 %v1593_v12 }
 0x10b   :  { %1181 = vmatpush3.msra.mxu1 %v1593_v12 }
 0x10c   :  { %1182 = vmatprep.subr.mxu1 %v1597_v14 }
 0x10d   :  { %1183 = vmatpush3.msra.mxu1 %v1597_v14 }
 0x10e   :  { %1184 = vmatprep.subr.mxu1 %v1601_v16 }
 0x10f   :  { %1185 = vmatpush3.msra.mxu1 %v1601_v16 }
 0x110   :  { %1186 = vmatprep.subr.mxu1 %v1606_v18 }
 0x111   :  { %1187 = vmatpush3.msra.mxu1 %v1606_v18 }
 0x112   :  { %1188 = vmatprep.subr.mxu1 %v1611_v20 }
 0x113   :  { %1189 = vmatpush3.msra.mxu1 %v1611_v20 }
 0x114   :  { %1190 = vmatprep.subr.mxu1 %v1615_v21 }
 0x115   :  { %1191 = vmatpush3.msra.mxu1 %v1615_v21 }
 0x116   :  { %1192 = vmatprep.subr.mxu1 %v1619_v22 }
 0x117   :  { %1193 = vmatpush3.msra.mxu1 %v1619_v22 }
 0x118   :  { %1195 = vmatmul.mubr.f32.vlgmr.msra.gmra.mxu1 %v1626_v23  ;;  %1330 = vmatprep.subr.mxu1 %v1718_v38 }
 0x119   :  { %1197 = vmatprep.mubr.f32.mxu1 %v1632_v24  ;;  %1346 = vmatpush3.msra.mxu1 %v1718_v38 }
 0x11a   :  { %1331 = vmatprep.subr.mxu1 %v1724_v39 }
 0x11b   :  { %1347 = vmatpush3.msra.mxu1 %v1724_v39 }
 0x11c   :  { %1198 = vmatmul.mubr.f32.gmra.mxu1 %v1640_v25  ;;  %1332 = vmatprep.subr.mxu1 %v1731_v40 }
 0x11d   :  { %1200 = vmatprep.mubr.f32.mxu1 %v1645_v26  ;;  %1348 = vmatpush3.msra.mxu1 %v1731_v40 }
 0x11e   :  { %1333 = vmatprep.subr.mxu1 %v1738_v41 }
 0x11f   :  { %1349 = vmatpush3.msra.mxu1 %v1738_v41 }
 0x120   :  { %1201 = vmatmul.mubr.f32.gmra.mxu1 %v1652_v27  ;;  %1334 = vmatprep.subr.mxu1 %v1745_v42 }
 0x121   :  { %1203 = vmatprep.mubr.f32.mxu1 %v1657_v28  ;;  %1350 = vmatpush3.msra.mxu1 %v1745_v42 }
 0x122   :  { %1335 = vmatprep.subr.mxu1 %v1752_v43 }
 0x123   :  { %1351 = vmatpush3.msra.mxu1 %v1752_v43 }
 0x124   :  { %1204 = vmatmul.mubr.f32.gmra.mxu1 %v1664_v29  ;;  %1336 = vmatprep.subr.mxu1 %v1759_v44 }
 0x125   :  { %1206 = vmatprep.mubr.f32.mxu1 %v1669_v30  ;;  %1352 = vmatpush3.msra.mxu1 %v1759_v44  ;;  %v352_v30 = vpop.permute.xlu1 %351  ;;  %v416_v44 = vmul.f32 0.6666667, %v1573_v2 }
 0x126   :  { %1337 = vmatprep.subr.mxu1 %v1766_v45 }
 0x127   :  { %1353 = vmatpush3.msra.mxu1 %v1766_v45 }
 0x128   :  { %1207 = vmatmul.mubr.f32.gmra.mxu1 %v1676_v31  ;;  %1338 = vmatprep.subr.mxu1 %v1773_v46  ;;  %v1817_v31 = vmul.f32 %v382_v63, %v1561_v60 }
 0x129   :  { %1209 = vmatprep.mubr.f32.mxu1 %v1681_v32  ;;  %1354 = vmatpush3.msra.mxu1 %v1773_v46 }
 0x12a   :  { %1339 = vmatprep.subr.mxu1 %v1780_v47 }
 0x12b   :  { %1355 = vmatpush3.msra.mxu1 %v1780_v47 }
 0x12c   :  { %1210 = vmatmul.mubr.f32.gmra.mxu1 %v1688_v33  ;;  %1340 = vmatprep.subr.mxu1 %v1787_v48  ;;  %v417_v33 = vmul.f32 0.6666667, %v1569_v0 }
 0x12d   :  { %1212 = vmatprep.mubr.f32.mxu1 %v1693_v34  ;;  %1356 = vmatpush3.msra.mxu1 %v1787_v48  ;;  %v419_v34 = vmul.f32 0.6666667, %v1561_v60  ;;  %v357_v48 = vpop.permute.xlu0 %356 }
 0x130   :  { %1213 = vmatmul.mubr.f32.gmra.mxu1 %v1700_v35 }
 0x131   :  { %1215 = vmatprep.mubr.f32.mxu1 %v1705_v36  ;;  %v1809_v36 = vmul.f32 %v387_v55, %v1559_v57  ;;  %v1821_v57 = vmul.f32 %v377_v58, %v1565_v62  ;;  %v413_v58 = vmul.f32 0.6666667, %v1585_v8 }
 0x134   :  { %1216 = vmatmul.mubr.f32.gmra.mxu1 %v1712_v37  ;;  %v418_v37 = vmul.f32 0.6666667, %v1565_v62  ;;  %v347_v62 = vpop.permute.xlu0 %346 }
 0x1d8   :  { %v1792_v49 = vpop.f32.mrf.mxu1 }
 0x1da   :  { %v1794_v50 = vpop.f32.mrf.mxu1 }
 0x1dc   :  { %v1796_v51 = vpop.f32.mrf.mxu1 }
 0x1de   :  { %v1798_v52 = vpop.f32.mrf.mxu1 }
 0x1e0   :  { %v1800_v53 = vpop.f32.mrf.mxu1 }
 0x1e2   :  { %v1802_v54 = vpop.f32.mrf.mxu1 }
 0x1e4   :  { %v1205_v56 = vpop.f32.mrf.mxu1 }
 0x1e6   :  { %v1804_v59 = vpop.f32.mrf.mxu1 }
 0x1e8   :  { %v1208_v61 = vpop.f32.mrf.mxu1 }
 0x1ea   :  { %v527_v1 = vpop.f32.mrf.mxu1 }
 0x1ec   :  { %v1211_v5 = vpop.f32.mrf.mxu1 }
 0x1ee   :  { %v537_v7 = vpop.f32.mrf.mxu1 }
 0x1f0   :  { %v1214_v11 = vpop.f32.mrf.mxu1 }
 0x1f1   :  { %v579_v32 = vadd.f32 %v1214_v11, %v418_v37  ;;  %v415_v37 = vmul.f32 0.6666667, %v1577_v4  ;;  %v411_v11 = vmul.f32 0.6666667, %v1593_v12 }
 0x1f2   :  { %v547_v15 = vpop.f32.mrf.mxu1 }
 0x1f3   :  { %v578_v55 = vadd.f32 %v547_v15, %v417_v33  ;;  %v1830_v60 = vadd.f32 %v579_v32, %v1821_v57  ;;  %v414_v33 = vmul.f32 0.6666667, %v1581_v6  ;;  %v342_v32 = vpop.permute.xlu1 %341  ;;  %v1869_v15 = vmul.f32 %v352_v30, %v1585_v8 }
 0x1f4   :  { %v1217_v19 = vpop.f32.mrf.mxu1  ;;  %v409_v30 = vmul.f32 0.6666667, %v1601_v16 }
 0x1f5   :  { %v581_v35 = vadd.f32 %v1217_v19, %v420_v17 }
 0x1f6   :  { %v557_v47 = vpop.f32.mrf.mxu1 }
 0x1f7   :  { %v1814_v46 = vadd.f32 %v581_v35, %v1809_v36  ;;  %v580_v45 = vadd.f32 %v557_v47, %v419_v34  ;;  %v577_v35 = vadd.f32 %v1211_v5, %v416_v44  ;;  %v1833_v34 = vmul.f32 %v372_v3, %v1569_v0 }
 0x1f8   :  { %v576_v47 = vadd.f32 %v537_v7, %v415_v37  ;;  %v575_v0 = vadd.f32 %v1208_v61, %v414_v33  ;;  %v1851_v3 = vmul.f32 %v362_v13, %v1577_v4  ;;  %v1857_v5 = vmul.f32 %v357_v48, %v1581_v6  ;;  %v332_v6 = vpop.permute.xlu1 %331 }
 0x1f9   :  { %v1824_v17 = vadd.f32 %v580_v45, %v1817_v31  ;;  %1218 = vmatprep.subr.mxu0 %v1814_v46  ;;  %v1839_v45 = vmul.f32 %v367_v9, %v1573_v2  ;;  %v1842_v44 = vadd.f32 %v578_v55, %v1833_v34  ;;  %v412_v2 = vmul.f32 0.6666667, %v1589_v10  ;;  %v337_v9 = vpop.permute.xlu0 %336 }
 0x1fa   :  { %1219 = vmatpush3.msra.mxu0 %v1814_v46  ;;  %v574_v7 = vadd.f32 %v527_v1, %v413_v58  ;;  %v1860_v61 = vadd.f32 %v576_v47, %v1851_v3  ;;  %v1866_v13 = vadd.f32 %v575_v0, %v1857_v5  ;;  %v410_v48 = vmul.f32 0.6666667, %v1597_v14 }
 0x1fb   :  { %1220 = vmatprep.subr.mxu0 %v1824_v17  ;;  %v1848_v63 = vadd.f32 %v577_v35, %v1839_v45  ;;  %v573_v4 = vadd.f32 %v1205_v56, %v412_v2  ;;  %v1875_v1 = vmul.f32 %v347_v62, %v1589_v10  ;;  %v572_v56 = vadd.f32 %v1804_v59, %v411_v11 }
 0x1fc   :  { %1221 = vmatpush3.msra.mxu0 %v1824_v17  ;;  %v1879_v19 = vadd.f32 %v574_v7, %v1869_v15  ;;  %v571_v8 = vadd.f32 %v1800_v53, %v410_v48  ;;  %v1889_v35 = vmul.f32 %v342_v32, %v1593_v12  ;;  %v408_v59 = vmul.f32 0.6666667, %v1606_v18  ;;  %v322_v33 = vpop.permute.xlu1 %321  ;;  %v809_v48 = vld [vmem:[%s2097_s5 + $0x10] sm:$0xff] }
 0x1fd   :  { %1222 = vmatprep.subr.mxu0 %v1830_v60  ;;  %v1886_v55 = vadd.f32 %v573_v4, %v1875_v1  ;;  %v327_v10 = vpop.permute.xlu0 %326  ;;  %v1895_v37 = vmul.f32 %v337_v9, %v1597_v14  ;;  %v570_v53 = vadd.f32 %v1802_v54, %v409_v30  ;;  %v407_v47 = vmul.f32 0.6666667, %v1611_v20 }
 0x1fe   :  { %1223 = vmatpush3.msra.mxu0 %v1830_v60  ;;  %v1899_v62 = vadd.f32 %v572_v56, %v1889_v35  ;;  %v569_v12 = vadd.f32 %v1796_v51, %v408_v59  ;;  %v1909_v14 = vmul.f32 %v332_v6, %v1601_v16  ;;  %v406_v54 = vmul.f32 0.6666667, %v1615_v21  ;;  %v808_v56 = vld [vmem:[%s2097_s5 + $0x8] sm:$0xff] }
 0x1ff   :  { %1224 = vmatprep.subr.mxu0 %v1842_v44  ;;  %v1906_v32 = vadd.f32 %v571_v8, %v1895_v37  ;;  %v1915_v0 = vmul.f32 %v327_v10, %v1606_v18  ;;  %v568_v58 = vadd.f32 %v1798_v52, %v407_v47  ;;  %v405_v7 = vmul.f32 0.6666667, %v1619_v22  ;;  %v807_v8 = vld [vmem:[%s2097_s5] sm:$0xff] }
 0x200   :  { %1225 = vmatpush3.msra.mxu0 %v1842_v44  ;;  %v1919_v51 = vadd.f32 %v570_v53, %v1909_v14  ;;  %v567_v16 = vadd.f32 %v1792_v49, %v406_v54  ;;  %v1929_v18 = vmul.f32 %v322_v33, %v1611_v20  ;;  %v312_v52 = vpop.permute.xlu1 %311 }
 0x201   :  { %1226 = vmatprep.subr.mxu0 %v1848_v63  ;;  %v317_v2 = vpop.permute.xlu0 %316  ;;  %v1926_v9 = vadd.f32 %v569_v12, %v1915_v0  ;;  %v566_v11 = vadd.f32 %v1794_v50, %v405_v7  ;;  %v1943_v20 = vmul.f32 %v312_v52, %v1619_v22  ;;  %v2131_v22 = vld [vmem:[#allocation13_spill] sm:$0xff]  ;;  %v810_v50 = vld [vmem:[%s2097_s5 + $0x18] sm:$0xff] }
 0x202   :  { %1227 = vmatpush3.msra.mxu0 %v1848_v63  ;;  %v1934_v4 = vmul.f32 %v317_v2, %v1615_v21  ;;  %v1938_v49 = vadd.f32 %v568_v58, %v1929_v18 }
 0x203   :  { %1228 = vmatprep.subr.mxu0 %v1860_v61  ;;  %v1951_v21 = vadd.f32 %v566_v11, %v1943_v20  ;;  %v601_v47 = vmul.f32 0.6666667, %v1926_v9 }
 0x204   :  { %1229 = vmatpush3.msra.mxu0 %v1860_v61  ;;  %v1946_v6 = vadd.f32 %v567_v16, %v1934_v4  ;;  %v600_v7 = vmul.f32 0.6666667, %v1938_v49 }
 0x205   :  { %1230 = vmatprep.subr.mxu0 %v1866_v13  ;;  %v598_v53 = vmul.f32 0.6666667, %v1951_v21 }
 0x206   :  { %1231 = vmatpush3.msra.mxu0 %v1866_v13  ;;  %v599_v30 = vmul.f32 0.6666667, %v1946_v6 }
 0x207   :  { %1232 = vmatprep.subr.mxu0 %v1879_v19 }
 0x208   :  { %1233 = vmatpush3.msra.mxu0 %v1879_v19 }
 0x209   :  { %1234 = vmatprep.subr.mxu0 %v1886_v55 }
 0x20a   :  { %1235 = vmatpush3.msra.mxu0 %v1886_v55 }
 0x20b   :  { %1236 = vmatprep.subr.mxu0 %v1899_v62 }
 0x20c   :  { %1237 = vmatpush3.msra.mxu0 %v1899_v62 }
 0x20d   :  { %1238 = vmatprep.subr.mxu0 %v1906_v32 }
 0x20e   :  { %1239 = vmatpush3.msra.mxu0 %v1906_v32 }
 0x20f   :  { %1240 = vmatprep.subr.mxu0 %v1919_v51 }
 0x210   :  { %1241 = vmatpush3.msra.mxu0 %v1919_v51 }
 0x211   :  { %1242 = vmatprep.subr.mxu0 %v1926_v9 }
 0x212   :  { %1243 = vmatpush3.msra.mxu0 %v1926_v9 }
 0x213   :  { %1244 = vmatprep.subr.mxu0 %v1938_v49 }
 0x214   :  { %1245 = vmatpush3.msra.mxu0 %v1938_v49  ;;  %v605_v49 = vmul.f32 0.6666667, %v1886_v55 }
 0x215   :  { %1246 = vmatprep.subr.mxu0 %v1946_v6 }
 0x216   :  { %1247 = vmatpush3.msra.mxu0 %v1946_v6  ;;  %v603_v6 = vmul.f32 0.6666667, %v1906_v32 }
 0x217   :  { %1248 = vmatprep.subr.mxu0 %v1951_v21 }
 0x218   :  { %1249 = vmatpush3.msra.mxu0 %v1951_v21 }
 0x219   :  { %1251 = vmatmul.mubr.f32.vlgmr.msra.gmra.mxu0 %v1626_v23  ;;  %1274 = vmatprep.subr.mxu0 %v1718_v38  ;;  %v2132_v23 = vld [vmem:[#allocation5_spill] sm:$0xff] }
 0x21a   :  { %1253 = vmatprep.mubr.f32.mxu0 %v1632_v24  ;;  %1275 = vmatpush3.msra.mxu0 %v1718_v38  ;;  %v2133_v24 = vld [vmem:[#allocation14_spill] sm:$0xff]  ;;  %v2139_v38 = vld [vmem:[#allocation17_spill] sm:$0xff] }
 0x21b   :  { %1276 = vmatprep.subr.mxu0 %v1724_v39 }
 0x21c   :  { %1277 = vmatpush3.msra.mxu0 %v1724_v39  ;;  %v2140_v39 = vld [vmem:[#allocation9_spill] sm:$0xff] }
 0x21d   :  { %1254 = vmatmul.mubr.f32.gmra.mxu0 %v1640_v25  ;;  %1278 = vmatprep.subr.mxu0 %v1731_v40  ;;  %v2134_v25 = vld [vmem:[#allocation6_spill] sm:$0xff] }
 0x21e   :  { %1256 = vmatprep.mubr.f32.mxu0 %v1645_v26  ;;  %1279 = vmatpush3.msra.mxu0 %v1731_v40  ;;  %v2135_v26 = vld [vmem:[#allocation15_spill] sm:$0xff]  ;;  %v2141_v40 = vld [vmem:[#allocation10_spill] sm:$0xff] }
 0x21f   :  { %1280 = vmatprep.subr.mxu0 %v1738_v41 }
 0x220   :  { %1281 = vmatpush3.msra.mxu0 %v1738_v41  ;;  %v2142_v41 = vld [vmem:[#allocation11_spill] sm:$0xff] }
 0x221   :  { %1257 = vmatmul.mubr.f32.gmra.mxu0 %v1652_v27  ;;  %1282 = vmatprep.subr.mxu0 %v1745_v42  ;;  %v2136_v27 = vld [vmem:[#allocation7_spill] sm:$0xff] }
 0x222   :  { %1259 = vmatprep.mubr.f32.mxu0 %v1657_v28  ;;  %1283 = vmatpush3.msra.mxu0 %v1745_v42  ;;  %v2137_v28 = vld [vmem:[#allocation16_spill] sm:$0xff] }
 0x223   :  { %1284 = vmatprep.subr.mxu0 %v1752_v43  ;;  %v2143_v42 = vld [vmem:[#allocation12_spill] sm:$0xff] }
 0x224   :  { %1285 = vmatpush3.msra.mxu0 %v1752_v43  ;;  %v811_v43 = vld [vmem:[%s2097_s5 + $0x20] sm:$0xff] }
 0x225   :  { %1260 = vmatmul.mubr.f32.gmra.mxu0 %v1664_v29  ;;  %1286 = vmatprep.subr.mxu0 %v2131_v22  ;;  %v2138_v29 = vld [vmem:[#allocation8_spill] sm:$0xff] }
 0x226   :  { %1262 = vmatprep.mubr.f32.mxu0 %v2132_v23  ;;  %1287 = vmatpush3.msra.mxu0 %v2131_v22 }
 0x227   :  { %1288 = vmatprep.subr.mxu0 %v2133_v24  ;;  %1341 = vmatprep.subr.mxu1 %v811_v43 }
 0x228   :  { %1289 = vmatpush3.msra.mxu0 %v2133_v24  ;;  %1357 = vmatpush3.msra.mxu1 %v811_v43 }
 0x229   :  { %1263 = vmatmul.mubr.f32.gmra.mxu0 %v2134_v25  ;;  %1290 = vmatprep.subr.mxu0 %v2135_v26 }
 0x22a   :  { %1265 = vmatprep.mubr.f32.mxu0 %v2136_v27  ;;  %1291 = vmatpush3.msra.mxu0 %v2135_v26 }
 0x22b   :  { %1292 = vmatprep.subr.mxu0 %v2137_v28  ;;  %1342 = vmatprep.subr.mxu1 %v810_v50 }
 0x22c   :  { %1293 = vmatpush3.msra.mxu0 %v2137_v28  ;;  %1358 = vmatpush3.msra.mxu1 %v810_v50 }
 0x22d   :  { %1266 = vmatmul.mubr.f32.gmra.mxu0 %v2138_v29  ;;  %1294 = vmatprep.subr.mxu0 %v2139_v38 }
 0x22e   :  { %1268 = vmatprep.mubr.f32.mxu0 %v2140_v39  ;;  %1295 = vmatpush3.msra.mxu0 %v2139_v38 }
 0x22f   :  { %1296 = vmatprep.subr.mxu0 %v811_v43  ;;  %1343 = vmatprep.subr.mxu1 %v809_v48 }
 0x230   :  { %1297 = vmatpush3.msra.mxu0 %v811_v43  ;;  %1359 = vmatpush3.msra.mxu1 %v809_v48 }
 0x231   :  { %1269 = vmatmul.mubr.f32.gmra.mxu0 %v2141_v40  ;;  %1298 = vmatprep.subr.mxu0 %v810_v50 }
 0x232   :  { %1271 = vmatprep.mubr.f32.mxu0 %v2142_v41  ;;  %1299 = vmatpush3.msra.mxu0 %v810_v50  ;;  %v607_v41 = vmul.f32 0.6666667, %v1866_v13 }
 0x233   :  { %1300 = vmatprep.subr.mxu0 %v809_v48  ;;  %1344 = vmatprep.subr.mxu1 %v808_v56 }
 0x234   :  { %1301 = vmatpush3.msra.mxu0 %v809_v48  ;;  %1360 = vmatpush3.msra.mxu1 %v808_v56 }
 0x235   :  { %1272 = vmatmul.mubr.f32.gmra.mxu0 %v2143_v42  ;;  %1302 = vmatprep.subr.mxu0 %v808_v56 }
 0x236   :  { %1303 = vmatpush3.msra.mxu0 %v808_v56  ;;  %1345 = vmatprep.subr.mxu1 %v807_v8 }
 0x237   :  { %1304 = vmatprep.subr.mxu0 %v807_v8  ;;  %1361 = vmatpush3.msra.mxu1 %v807_v8 }
 0x238   :  { %1305 = vmatpush3.msra.mxu0 %v807_v8  ;;  %v609_v8 = vmul.f32 0.6666667, %v1848_v63 }
 0x2d9   :  { %v1252_v10 = vpop.f32.mrf.mxu0 }
 0x2da   :  { %v760_v59 = vadd.f32 %v1252_v10, %v599_v30 }
 0x2db   :  { %v680_v33 = vpop.f32.mrf.mxu0 }
 0x2dc   :  { %v759_v12 = vadd.f32 %v680_v33, %v598_v53  ;;  %v776_v54 = vadd.f32 %v760_v59, %v1934_v4  ;;  %v602_v4 = vmul.f32 0.6666667, %v1919_v51 }
 0x2dd   :  { %v1255_v58 = vpop.f32.mrf.mxu0 }
 0x2de   :  { %v775_v2 = vadd.f32 %v759_v12, %v1943_v20  ;;  %v762_v16 = vadd.f32 %v1255_v58, %v601_v47  ;;  %v792_v23 = vmax.f32 %v776_v54, 0.0  ;;  %v611_v12 = vmul.f32 0.6666667, %v1830_v60 }
 0x2df   :  { %v690_v52 = vpop.f32.mrf.mxu0 }
 0x2e0   :  { %v791_v11 = vmax.f32 %v775_v2, 0.0  ;;  %v761_v22 = vadd.f32 %v690_v52, %v600_v7  ;;  %v778_v21 = vadd.f32 %v762_v16, %v1915_v0  ;;  %v613_v7 = vmul.f32 0.6666667, %v1814_v46 }
 0x2e1   :  { %v1258_v24 = vpop.f32.mrf.mxu0 }
 0x2e2   :  { %v777_v25 = vadd.f32 %v761_v22, %v1929_v18  ;;  %v764_v9 = vadd.f32 %v1258_v24, %v603_v6  ;;  %1306 = vmatprep.mubr.f32.mxu0 %v791_v11  ;;  %v794_v28 = vmax.f32 %v778_v21, 0.0  ;;  %v604_v18 = vmul.f32 0.6666667, %v1899_v62 }
 0x2e3   :  { %v700_v26 = vpop.f32.mrf.mxu0  ;;  %1307 = vmatmul.mubr.f32.vlgmr.msra.gmra.mxu0 %v792_v23 }
 0x2e4   :  { %v793_v20 = vmax.f32 %v777_v25, 0.0  ;;  %v763_v27 = vadd.f32 %v700_v26, %v602_v4  ;;  %v780_v29 = vadd.f32 %v764_v9, %v1895_v37 }
 0x2e5   :  { %v1261_v32 = vpop.f32.mrf.mxu0 }
 0x2e6   :  { %v779_v38 = vadd.f32 %v763_v27, %v1909_v14  ;;  %v766_v0 = vadd.f32 %v1261_v32, %v605_v49  ;;  %1309 = vmatprep.mubr.f32.mxu0 %v793_v20  ;;  %v796_v42 = vmax.f32 %v780_v29, 0.0  ;;  %v606_v14 = vmul.f32 0.6666667, %v1879_v19 }
 0x2e7   :  { %v710_v39 = vpop.f32.mrf.mxu0  ;;  %1310 = vmatmul.mubr.f32.gmra.mxu0 %v794_v28 }
 0x2e8   :  { %v795_v40 = vmax.f32 %v779_v38, 0.0  ;;  %v765_v51 = vadd.f32 %v710_v39, %v604_v18  ;;  %v782_v43 = vadd.f32 %v766_v0, %v1875_v1 }
 0x2e9   :  { %v1264_v55 = vpop.f32.mrf.mxu0 }
 0x2ea   :  { %v781_v50 = vadd.f32 %v765_v51, %v1889_v35  ;;  %v768_v37 = vadd.f32 %v1264_v55, %v607_v41  ;;  %1312 = vmatprep.mubr.f32.mxu0 %v795_v40  ;;  %v798_v30 = vmax.f32 %v782_v43, 0.0  ;;  %v608_v35 = vmul.f32 0.6666667, %v1860_v61 }
 0x2eb   :  { %v720_v48 = vpop.f32.mrf.mxu0  ;;  %1313 = vmatmul.mubr.f32.gmra.mxu0 %v796_v42 }
 0x2ec   :  { %v797_v56 = vmax.f32 %v781_v50, 0.0  ;;  %v767_v62 = vadd.f32 %v720_v48, %v606_v14  ;;  %v784_v10 = vadd.f32 %v768_v37, %v1857_v5 }
 0x2ed   :  { %v1267_v13 = vpop.f32.mrf.mxu0 }
 0x2ee   :  { %v783_v59 = vadd.f32 %v767_v62, %v1869_v15  ;;  %v770_v1 = vadd.f32 %v1267_v13, %v609_v8  ;;  %1315 = vmatprep.mubr.f32.mxu1 %v797_v56  ;;  %v800_v47 = vmax.f32 %v784_v10, 0.0  ;;  %v610_v15 = vmul.f32 0.6666667, %v1842_v44 }
 0x2ef   :  { %v730_v53 = vpop.f32.mrf.mxu0  ;;  %1316 = vmatmul.mubr.f32.vlgmr.msra.gmra.mxu1 %v798_v30 }
 0x2f0   :  { %v799_v33 = vmax.f32 %v783_v59, 0.0  ;;  %v769_v19 = vadd.f32 %v730_v53, %v608_v35  ;;  %v786_v54 = vadd.f32 %v770_v1, %v1839_v45 }
 0x2f1   :  { %v1270_v63 = vpop.f32.mrf.mxu0 }
 0x2f2   :  { %v785_v58 = vadd.f32 %v769_v19, %v1851_v3  ;;  %v772_v5 = vadd.f32 %v1270_v63, %v611_v12  ;;  %1318 = vmatprep.mubr.f32.mxu1 %v799_v33  ;;  %v802_v52 = vmax.f32 %v786_v54, 0.0  ;;  %v612_v3 = vmul.f32 0.6666667, %v1824_v17 }
 0x2f3   :  { %v740_v2 = vpop.f32.mrf.mxu0  ;;  %1319 = vmatmul.mubr.f32.gmra.mxu1 %v800_v47 }
 0x2f4   :  { %v801_v16 = vmax.f32 %v785_v58, 0.0  ;;  %v771_v61 = vadd.f32 %v740_v2, %v610_v15  ;;  %v788_v11 = vadd.f32 %v772_v5, %v1821_v57 }
 0x2f5   :  { %v1273_v60 = vpop.f32.mrf.mxu0 }
 0x2f6   :  { %v787_v22 = vadd.f32 %v771_v61, %v1833_v34  ;;  %v774_v45 = vadd.f32 %v1273_v60, %v613_v7  ;;  %1321 = vmatprep.mubr.f32.mxu1 %v801_v16  ;;  %v804_v21 = vmax.f32 %v788_v11, 0.0  ;;  %v1013_v34 = vld [vmem:[%s2098_s6] ss:$0 sm:$0xff] }
 0x2f7   :  { %v750_v6 = vpop.f32.mrf.mxu0  ;;  %1322 = vmatmul.mubr.f32.gmra.mxu1 %v802_v52 }
 0x2f8   :  { %v803_v23 = vmax.f32 %v787_v22, 0.0  ;;  %v773_v44 = vadd.f32 %v750_v6, %v612_v3  ;;  %v790_v24 = vadd.f32 %v774_v45, %v1809_v36 }
 0x2fa   :  { %v789_v25 = vadd.f32 %v773_v44, %v1817_v31  ;;  %1324 = vmatprep.mubr.f32.mxu1 %v803_v23  ;;  %v806_v57 = vmax.f32 %v790_v24, 0.0 }
 0x2fb   :  { %1325 = vmatmul.mubr.f32.gmra.mxu1 %v804_v21 }
 0x2fc   :  { %v805_v46 = vmax.f32 %v789_v25, 0.0 }
 0x2fe   :  { %1327 = vmatprep.mubr.f32.mxu1 %v805_v46 }
 0x2ff   :  { %1328 = vmatmul.mubr.f32.gmra.mxu1 %v806_v57 }
 0x3a3   :  { %v1308_v17 = vpop.f32.mrf.mxu0 }
 0x3a4   :  { %v902_v9 = vadd.f32 %v1308_v17, %v1013_v34 }
 0x3a5   :  { %v896_v4 = vpop.f32.mrf.mxu0 }
 0x3a6   :  { %976 = vst [vmem:[%s2099_s7 + $0x8] sm:$0xff] %v902_v9  ;;  %v897_v36 = vadd.f32 %v1013_v34, %v896_v4 }
 0x3a7   :  { %v1311_v26 = vpop.f32.mrf.mxu0 }
 0x3a8   :  { %975 = vst [vmem:[%s2099_s7] sm:$0xff] %v897_v36  ;;  %v912_v31 = vadd.f32 %v1311_v26, %v1013_v34 }
 0x3a9   :  { %v906_v20 = vpop.f32.mrf.mxu0 }
 0x3aa   :  { %978 = vst [vmem:[%s2099_s7 + $0x18] sm:$0xff] %v912_v31  ;;  %v907_v27 = vadd.f32 %v1013_v34, %v906_v20 }
 0x3ab   :  { %v1314_v49 = vpop.f32.mrf.mxu0 }
 0x3ac   :  { %977 = vst [vmem:[%s2099_s7 + $0x10] sm:$0xff] %v907_v27  ;;  %v922_v28 = vadd.f32 %v1314_v49, %v1013_v34 }
 0x3ad   :  { %v916_v29 = vpop.f32.mrf.mxu0 }
 0x3ae   :  { %980 = vst [vmem:[%s2099_s7 + $0x28] sm:$0xff] %v922_v28  ;;  %v917_v32 = vadd.f32 %v1013_v34, %v916_v29 }
 0x3af   :  { %v1317_v38 = vpop.f32.mrf.mxu1 }
 0x3b0   :  { %979 = vst [vmem:[%s2099_s7 + $0x20] sm:$0xff] %v917_v32  ;;  %v932_v0 = vadd.f32 %v1317_v38, %v1013_v34 }
 0x3b1   :  { %v926_v18 = vpop.f32.mrf.mxu1 }
 0x3b2   :  { %982 = vst [vmem:[%s2099_s7 + $0x38] sm:$0xff] %v932_v0  ;;  %v927_v39 = vadd.f32 %v1013_v34, %v926_v18 }
 0x3b3   :  { %v1320_v40 = vpop.f32.mrf.mxu1 }
 0x3b4   :  { %981 = vst [vmem:[%s2099_s7 + $0x30] sm:$0xff] %v927_v39  ;;  %v942_v51 = vadd.f32 %v1320_v40, %v1013_v34 }
 0x3b5   :  { %v936_v41 = vpop.f32.mrf.mxu1 }
 0x3b6   :  { %984 = vst [vmem:[%s2099_s7 + $0x48] sm:$0xff] %v942_v51  ;;  %v937_v42 = vadd.f32 %v1013_v34, %v936_v41 }
 0x3b7   :  { %v1323_v43 = vpop.f32.mrf.mxu1 }
 0x3b8   :  { %983 = vst [vmem:[%s2099_s7 + $0x40] sm:$0xff] %v937_v42  ;;  %v952_v55 = vadd.f32 %v1323_v43, %v1013_v34 }
 0x3b9   :  { %v946_v50 = vpop.f32.mrf.mxu1 }
 0x3ba   :  { %986 = vst [vmem:[%s2099_s7 + $0x58] sm:$0xff] %v952_v55  ;;  %v947_v37 = vadd.f32 %v1013_v34, %v946_v50 }
 0x3bb   :  { %v1326_v14 = vpop.f32.mrf.mxu1 }
 0x3bc   :  { %985 = vst [vmem:[%s2099_s7 + $0x50] sm:$0xff] %v947_v37  ;;  %v962_v48 = vadd.f32 %v1326_v14, %v1013_v34 }
 0x3bd   :  { %v956_v56 = vpop.f32.mrf.mxu1 }
 0x3be   :  { %988 = vst [vmem:[%s2099_s7 + $0x68] sm:$0xff] %v962_v48  ;;  %v957_v62 = vadd.f32 %v1013_v34, %v956_v56 }
 0x3bf   :  { %v1329_v8 = vpop.f32.mrf.mxu1 }
 0x3c0   :  { %987 = vst [vmem:[%s2099_s7 + $0x60] sm:$0xff] %v957_v62  ;;  %v972_v30 = vadd.f32 %v1329_v8, %v1013_v34 }
 0x3c1   :  { %v966_v10 = vpop.f32.mrf.mxu1 }
 0x3c2   :  { %990 = vst [vmem:[%s2099_s7 + $0x78] sm:$0xff] %v972_v30  ;;  %v967_v13 = vadd.f32 %v1013_v34, %v966_v10 }
 0x3c4   :  { %989 = vst [vmem:[%s2099_s7 + $0x70] sm:$0xff] %v967_v13 }
 0x3c5   :  { %995 = vsyncpa [#allocation3], 1 }

</bundles_post_ra>
